<compile_context>
chip_gen: v5e
topology: v5e:2x2
jax: 0.10.0
libtpu: 0.0.40
codegen_flags: <defaults>
</compile_context>

<pallas_src>
import functools

import jax
import jax.numpy as jnp
from jax import lax
from jax.experimental import pallas as pl
from jax.experimental.pallas import tpu as pltpu

EPS = 1e-6


def _round_up(x, m):
    return ((x + m - 1) // m) * m


def _kg_embedding_kernel(ids_ref, table_ref, gamma_ref, beta_ref, out_ref,
                         *, hidden, vocab, apply_layernorm, use_onehot):
    """Gather one tile of embedding rows and (optionally) layer-normalize them.

    ids_ref   : VMEM int32 [tm, 1]   (token ids for this tile)
    table_ref : VMEM       [V, H]    (full embedding table, VMEM-resident)
    gamma_ref : VMEM f32   [1, H]
    beta_ref  : VMEM f32   [1, H]
    out_ref   : VMEM       [tm, H]   (written exactly once)
    """
    ids = ids_ref[...]                    # (tm, 1) int32
    table = table_ref[...]                # (V, H)
    tm = ids.shape[0]

    if use_onehot:
        # Small vocab: one-hot @ table on the MXU.  HIGHEST precision so f32 table
        # values are reproduced exactly (multi-pass), not bf16-rounded.
        iota = lax.broadcasted_iota(jnp.int32, (tm, vocab), 1)
        onehot = (ids == iota).astype(table.dtype)               # (tm, V)
        x = lax.dot_general(
            onehot, table,
            dimension_numbers=(((1,), (0,)), ((), ())),
            precision=lax.Precision.HIGHEST,
            preferred_element_type=jnp.float32)                  # (tm, H) f32
    else:
        # Larger vocab (still VMEM-resident): Mosaic dynamic gather along sublanes.
        x = jnp.take(table, ids[:, 0], axis=0).astype(jnp.float32)

    if apply_layernorm:
        # Two-pass, unbiased (ddof=1) statistics; exact reciprocal.  LN is a small
        # fraction of the tile cost, so exactness is free.
        mean = jnp.mean(x, axis=-1, keepdims=True)
        d = x - mean
        var = jnp.sum(d * d, axis=-1, keepdims=True) * (1.0 / (hidden - 1))
        std = jnp.sqrt(var)
        inv = 1.0 / (std + EPS)
        y = d * (gamma_ref[...] * inv) + beta_ref[...]
    else:
        y = x

    # Dropout is identity in eval mode.
    out_ref[...] = y.astype(out_ref.dtype)


def kg_embedding(src, ent_table, gamma, beta, *, tm=512,
                 remove_embedding_layernorm=False, onehot_max_vocab=2048):
    """src: [B, S] int, ent_table: [V, H], gamma/beta: [H] -> [B, S, H]."""
    B, S = src.shape
    V, H = ent_table.shape
    assert H > 1, "unbiased std (ddof=1) requires hidden_size > 1"
    N = B * S

    # Row tiling: multiple of 8 sublanes, clamped for tiny inputs, N padded up to it.
    tm_eff = min(tm, _round_up(N, 8))
    tm_eff = _round_up(max(tm_eff, 8), 8)
    Np = _round_up(N, tm_eff)

    ids = src.reshape(-1).astype(jnp.int32)
    if Np != N:
        ids = jnp.pad(ids, (0, Np - N))       # padded rows gather row 0, then discarded
    ids2 = ids.reshape(Np, 1)

    gamma2 = gamma.reshape(1, H).astype(jnp.float32)
    beta2 = beta.reshape(1, H).astype(jnp.float32)

    # --- VMEM residency / limit accounting (per-TC budget) ---------------------------
    itemsize = jnp.dtype(ent_table.dtype).itemsize
    try:
        vmem_cap = int(pltpu.get_tpu_info().vmem_capacity_bytes)
    except Exception:
        vmem_cap = 64 << 20                   # conservative per-TC budget (v7x)
    table_bytes = V * H * itemsize
    vmem_need = (2 * table_bytes              # table (double-buffered by default pipeline)
                 + 2 * 2 * H * 4              # gamma + beta
                 + 2 * tm_eff * 4             # ids tile (int32)
                 + 2 * tm_eff * H * itemsize  # output tile
                 + tm_eff * H * 4)            # in-kernel f32 values (headroom)
    if vmem_need > vmem_cap:
        # TODO(synk): fall back to the HBM-resident table + manual DMA-gather path here.
        raise NotImplementedError(
            "embedding table does not fit in per-TC VMEM; HBM-gather path not implemented")
    vmem_limit = int(min(max(2 * vmem_need, 16 << 20), vmem_cap))

    kernel = functools.partial(
        _kg_embedding_kernel, hidden=H, vocab=V,
        apply_layernorm=not remove_embedding_layernorm,
        use_onehot=(V <= onehot_max_vocab))

    out = pl.pallas_call(
        kernel,
        out_shape=jax.ShapeDtypeStruct((Np, H), ent_table.dtype),
        grid=(Np // tm_eff,),
        in_specs=[
            pl.BlockSpec((tm_eff, 1), lambda i: (i, 0)),   # ids tile
            pl.BlockSpec((V, H), lambda i: (0, 0)),        # full table, VMEM-resident
            pl.BlockSpec((1, H), lambda i: (0, 0)),        # gamma
            pl.BlockSpec((1, H), lambda i: (0, 0)),        # beta
        ],
        out_specs=pl.BlockSpec((tm_eff, H), lambda i: (i, 0)),
        compiler_params=pltpu.CompilerParams(
            dimension_semantics=("parallel",),             # independent row tiles
            vmem_limit_bytes=vmem_limit,
        ),
    )(ids2, ent_table, gamma2, beta2)

    if Np != N:
        out = out[:N]
    return out.reshape(B, S, H)


if __name__ == "__main__":
    # Small synthetic config (stands in for args.kg_emb_size / torch.load(args.kg_emb_path)).
    B, S = 2, 8          # batch_size x seq_length
    V, H = 64, 32        # kg vocab size x kg_emb_size

    key = jax.random.PRNGKey(0)
    k_tab, k_src, k_g, k_b = jax.random.split(key, 4)

    ent_table = jax.random.normal(k_tab, (V, H), dtype=jnp.float32)
    gamma = 1.0 + 0.1 * jax.random.normal(k_g, (H,), dtype=jnp.float32)
    beta = 0.1 * jax.random.normal(k_b, (H,), dtype=jnp.float32)
    src = jax.random.randint(k_src, (B, S), 0, V, dtype=jnp.int32)

    out = kg_embedding(src, ent_table, gamma, beta)
    out = jax.block_until_ready(out)

    # Pure-JAX reference (eval-mode dropout == identity; UER LayerNorm, ddof=1, eps=1e-6).
    emb_ref = ent_table[src]
    mean = emb_ref.mean(-1, keepdims=True)
    std = jnp.std(emb_ref, axis=-1, keepdims=True, ddof=1)
    ref = gamma * (emb_ref - mean) / (std + EPS) + beta

    assert out.shape == (B, S, H)
    err = float(jnp.max(jnp.abs(out - ref)))
    assert jnp.allclose(out, ref, atol=1e-3, rtol=1e-3), f"LN mismatch vs reference (max abs err {err})"

    # Also check the remove_embedding_layernorm=True path (pure embedding lookup).
    out_noln = kg_embedding(src, ent_table, gamma, beta, remove_embedding_layernorm=True)
    out_noln = jax.block_until_ready(out_noln)
    err2 = float(jnp.max(jnp.abs(out_noln - emb_ref)))
    assert jnp.allclose(out_noln, emb_ref, atol=1e-3, rtol=1e-3), f"lookup mismatch (max abs err {err2})"

    print("KERNEL_OK")
</pallas_src>

<mosaic_0001>
module attributes {stable_mosaic.version = 11 : i64} {
  func.func @_kg_embedding_kernel(%arg0: i32, %arg1: memref<16x1xi32, #tpu.memory_space<vmem>>, %arg2: memref<64x32xf32, #tpu.memory_space<vmem>>, %arg3: memref<1x32xf32, #tpu.memory_space<vmem>>, %arg4: memref<1x32xf32, #tpu.memory_space<vmem>>, %arg5: memref<16x32xf32, #tpu.memory_space<vmem>>) attributes {dimension_semantics = [#tpu.dimension_semantics<parallel>], iteration_bounds = array<i64: 1>, scalar_prefetch = 0 : i64, scratch_operands = 0 : i64, tpu.core_type = #tpu.core_type<tc>, window_params = [{transform_indices = @transform_0, window_bounds = array<i64: 16, 1>}, {pipeline_mode = #tpu.pipeline_mode<synchronous>, transform_indices = @transform_1, window_bounds = array<i64: 64, 32>}, {pipeline_mode = #tpu.pipeline_mode<synchronous>, transform_indices = @transform_2, window_bounds = array<i64: 1, 32>}, {pipeline_mode = #tpu.pipeline_mode<synchronous>, transform_indices = @transform_3, window_bounds = array<i64: 1, 32>}, {transform_indices = @transform_4, window_bounds = array<i64: 16, 32>}]} {
    %c0 = arith.constant 0 : index
    %c0_0 = arith.constant 0 : index
    %0 = vector.load %arg1[%c0, %c0_0] : memref<16x1xi32, #tpu.memory_space<vmem>>, vector<16x1xi32>
    %c0_1 = arith.constant 0 : index
    %c0_2 = arith.constant 0 : index
    %1 = vector.load %arg2[%c0_1, %c0_2] : memref<64x32xf32, #tpu.memory_space<vmem>>, vector<64x32xf32>
    %2 = tpu.iota {dimensions = array<i32: 1>} : vector<16x64xi32>
    %3 = vector.broadcast %0 : vector<16x1xi32> to vector<16x64xi32>
    %4 = arith.cmpi eq, %3, %2 : vector<16x64xi32>
    %5 = arith.extui %4 : vector<16x64xi1> to vector<16x64xi32>
    %6 = arith.sitofp %5 : vector<16x64xi32> to vector<16x64xf32>
    %cst = arith.constant dense<0.000000e+00> : vector<16x32xf32>
    %7 = tpu.matmul %6, %1, %cst {dimension_numbers = #tpu.dot_dimension_numbers<[1], [0], [0], [1], [0, 0, 1, 1], [], []>, precision = #tpu.contract_precision<fp32>} : vector<16x64xf32>, vector<64x32xf32>, vector<16x32xf32> -> vector<16x32xf32>
    %cst_3 = arith.constant dense<0.000000e+00> : vector<16xf32>
    %8 = vector.multi_reduction <add>, %7, %cst_3 [1] : vector<16x32xf32> to vector<16xf32>
    %9 = vector.shape_cast %8 : vector<16xf32> to vector<16x1xf32>
    %cst_4 = arith.constant 3.200000e+01 : f32
    %10 = vector.broadcast %cst_4 : f32 to vector<16x1xf32>
    %11 = arith.divf %9, %10 : vector<16x1xf32>
    %12 = vector.broadcast %11 : vector<16x1xf32> to vector<16x32xf32>
    %13 = arith.subf %7, %12 : vector<16x32xf32>
    %14 = arith.mulf %13, %13 : vector<16x32xf32>
    %cst_5 = arith.constant dense<0.000000e+00> : vector<16xf32>
    %15 = vector.multi_reduction <add>, %14, %cst_5 [1] : vector<16x32xf32> to vector<16xf32>
    %16 = vector.shape_cast %15 : vector<16xf32> to vector<16x1xf32>
    %cst_6 = arith.constant 0.0322580636 : f32
    %17 = vector.broadcast %cst_6 : f32 to vector<16x1xf32>
    %18 = arith.mulf %16, %17 : vector<16x1xf32>
    %19 = math.sqrt %18 : vector<16x1xf32>
    %cst_7 = arith.constant 9.99999997E-7 : f32
    %20 = vector.broadcast %cst_7 : f32 to vector<16x1xf32>
    %21 = arith.addf %19, %20 : vector<16x1xf32>
    %cst_8 = arith.constant 1.000000e+00 : f32
    %22 = vector.broadcast %cst_8 : f32 to vector<16x1xf32>
    %23 = arith.divf %22, %21 : vector<16x1xf32>
    %c0_9 = arith.constant 0 : index
    %c0_10 = arith.constant 0 : index
    %24 = vector.load %arg3[%c0_9, %c0_10] : memref<1x32xf32, #tpu.memory_space<vmem>>, vector<1x32xf32>
    %25 = vector.broadcast %24 : vector<1x32xf32> to vector<16x32xf32>
    %26 = vector.broadcast %23 : vector<16x1xf32> to vector<16x32xf32>
    %27 = arith.mulf %25, %26 : vector<16x32xf32>
    %28 = arith.mulf %13, %27 : vector<16x32xf32>
    %c0_11 = arith.constant 0 : index
    %c0_12 = arith.constant 0 : index
    %29 = vector.load %arg4[%c0_11, %c0_12] : memref<1x32xf32, #tpu.memory_space<vmem>>, vector<1x32xf32>
    %30 = vector.broadcast %29 : vector<1x32xf32> to vector<16x32xf32>
    %31 = arith.addf %28, %30 : vector<16x32xf32>
    %c0_13 = arith.constant 0 : index
    %c0_14 = arith.constant 0 : index
    %32 = vector.load %arg5[%c0_13, %c0_14] : memref<16x32xf32, #tpu.memory_space<vmem>>, vector<16x32xf32>
    tpu.vector_store %arg5[%c0_13, %c0_14], %31 {strides = array<i32>} : memref<16x32xf32, #tpu.memory_space<vmem>>, vector<16x32xf32>,
    return
  }
  func.func @transform_0(%arg0: i32) -> (i32, i32) {
    %c0_i32 = arith.constant 0 : i32
    %c0_i32_0 = arith.constant 0 : i32
    return %arg0, %c0_i32 : i32, i32
  }
  func.func @transform_1(%arg0: i32) -> (i32, i32) {
    %c0_i32 = arith.constant 0 : i32
    %c0_i32_0 = arith.constant 0 : i32
    %c0_i32_1 = arith.constant 0 : i32
    return %c0_i32, %c0_i32_0 : i32, i32
  }
  func.func @transform_2(%arg0: i32) -> (i32, i32) {
    %c0_i32 = arith.constant 0 : i32
    %c0_i32_0 = arith.constant 0 : i32
    %c0_i32_1 = arith.constant 0 : i32
    return %c0_i32, %c0_i32_0 : i32, i32
  }
  func.func @transform_3(%arg0: i32) -> (i32, i32) {
    %c0_i32 = arith.constant 0 : i32
    %c0_i32_0 = arith.constant 0 : i32
    %c0_i32_1 = arith.constant 0 : i32
    return %c0_i32, %c0_i32_0 : i32, i32
  }
  func.func @transform_4(%arg0: i32) -> (i32, i32) {
    %c0_i32 = arith.constant 0 : i32
    %c0_i32_0 = arith.constant 0 : i32
    return %arg0, %c0_i32 : i32, i32
  }
}

</mosaic_0001>

<bundles_post_ra>
// kernel: tpu_custom_call.1
= control target key start
LH: loop header
LB: loop body
LE: loop exit
PB: predicated region body
PF: predicated region fallthrough
CT: control target
= control target key end

     0   :  { %v504_v2 = vmov 0   ;;  %s657_s0 = inlined_call_operand.vmem [shape: s32[16,1], index: 0, kind: input, shape index: {}]   ;;  %s658_s1 = inlined_call_operand.vmem [shape: f32[64,32], index: 1, kind: input, shape index: {}]   ;;  %s659_s2 = inlined_call_operand.vmem [shape: f32[1,32], index: 2, kind: input, shape index: {}]   ;;  %s660_s3 = inlined_call_operand.vmem [shape: f32[1,32], index: 3, kind: input, shape index: {}]   ;;  %s661_s4 = inlined_call_operand.hbm [shape: f32[16,32], index: 4, kind: output, shape index: {}]  }
   0x1   :  { %v18_v0 = vld [vmem:[%s657_s0] sm:$0xff]  ;;  %v27_v1 = vld [vmem:[%s658_s1 + $0x38] sm:$0xff]  ;;  %465 = vset.pattern.permute.xlu0 %v504_v2  ;;  %v26_v4 = vld [vmem:[%s658_s1 + $0x30] sm:$0xff] }
   0x2   :  { %v541_v3 = vand.u32 4294901760, %v27_v1  ;;  %v25_v5 = vld [vmem:[%s658_s1 + $0x28] sm:$0xff]  ;;  %v24_v6 = vld [vmem:[%s658_s1 + $0x20] sm:$0xff]  ;;  %31 = vperm.xlu0 %465, %v18_v0   ;;  %v552_v7 = vand.u32 4294901760, %v26_v4  ;;  %v23_v10 = vld [vmem:[%s658_s1 + $0x18] sm:$0xff] }
   0x3   :  { %v554_v8 = vand.u32 4294901760, %v25_v5  ;;  %v556_v9 = vand.u32 4294901760, %v24_v6  ;;  %v22_v11 = vld [vmem:[%s658_s1 + $0x10] sm:$0xff]  ;;  %v21_v12 = vld [vmem:[%s658_s1 + $0x8] sm:$0xff]  ;;  %v569_v14 = vand.u32 4294901760, %v23_v10 }
   0x4   :  { %v99_v13 = vsub.f32 %v27_v1, %v541_v3  ;;  %207 = vmatpush.msra.mxu3 %v541_v3  ;;  %58 = vmatpush.msra.mxu0 %v541_v3  ;;  %v572_v15 = vand.u32 4294901760, %v22_v11  ;;  %v574_v16 = vand.u32 4294901760, %v21_v12 }
   0x5   :  { %9 = vsyncpa [#allocation3], 0  ;;  %v105_v17 = vsub.f32 %v26_v4, %v552_v7  ;;  %v111_v18 = vsub.f32 %v25_v5, %v554_v8  ;;  %v117_v19 = vsub.f32 %v24_v6, %v556_v9  ;;  %v123_v21 = vsub.f32 %v23_v10, %v569_v14  ;;  %v19_v26 = vld [vmem:[%s657_s0 + $0x8] sm:$0xff]  ;;  %v20_v45 = vld [vmem:[%s658_s1] sm:$0xff]  ;;  %s423_s13 = sshll.u32 %s661_s4, 4  ;;  %s508_s14 = smov 128   ;;  %s424_s13 = int_to_ptr.hbm [resolvable:$true] %s423_s13 }
   0x6   :  { %v100_v20 = vand.u32 4294901760, %v99_v13  ;;  %165 = vmatpush.msra.mxu2 %v99_v13  ;;  %209 = vmatpush.msra.mxu3 %v552_v7  ;;  %v129_v22 = vsub.f32 %v22_v11, %v572_v15  ;;  %v135_v29 = vsub.f32 %v21_v12, %v574_v16  ;;  %v71_v46 = vand.u32 4294901760, %v20_v45  ;;  %s509_s15 = smov 8  }
   0x7   :  { %v106_v23 = vand.u32 4294901760, %v105_v17  ;;  %v112_v24 = vand.u32 4294901760, %v111_v18  ;;  %v582_v25 = vand.u32 4294901760, %v117_v19  ;;  %60 = vmatpush.msra.mxu0 %v552_v7  ;;  %v588_v28 = vand.u32 4294901760, %v123_v21 }
   0x8   :  { %v101_v27 = vsub.f32 %v99_v13, %v100_v20  ;;  %168 = vmatpush.msra.mxu2 %v105_v17  ;;  %211 = vmatpush.msra.mxu3 %v554_v8  ;;  %v130_v34 = vand.u32 4294901760, %v129_v22  ;;  %v136_v38 = vand.u32 4294901760, %v135_v29  ;;  %v141_v47 = vsub.f32 %v20_v45, %v71_v46 }
   0x9   :  { %v107_v30 = vsub.f32 %v105_v17, %v106_v23  ;;  %v113_v31 = vsub.f32 %v111_v18, %v112_v24  ;;  %62 = vmatpush.msra.mxu0 %v554_v8  ;;  %v119_v33 = vsub.f32 %v117_v19, %v582_v25  ;;  %v125_v37 = vsub.f32 %v123_v21, %v588_v28 }
   0xa   :  { %v102_v32 = vand.u32 4294901760, %v101_v27  ;;  %171 = vmatpush.msra.mxu2 %v111_v18  ;;  %213 = vmatpush.msra.mxu3 %v556_v9  ;;  %v131_v40 = vsub.f32 %v129_v22, %v130_v34  ;;  %v137_v42 = vsub.f32 %v135_v29, %v136_v38  ;;  %v142_v48 = vand.u32 4294901760, %v141_v47 }
   0xb   :  { %34 = vperm.xlu0 %465, %v19_v26   ;;  %v108_v35 = vand.u32 4294901760, %v107_v30  ;;  %64 = vmatpush.msra.mxu0 %v556_v9  ;;  %v114_v36 = vand.u32 4294901760, %v113_v31  ;;  %v120_v39 = vand.u32 4294901760, %v119_v33  ;;  %v126_v41 = vand.u32 4294901760, %v125_v37 }
   0xc   :  { %103 = vmatpush.msra.mxu1 %v102_v32  ;;  %174 = vmatpush.msra.mxu2 %v117_v19  ;;  %v132_v43 = vand.u32 4294901760, %v131_v40  ;;  %v138_v44 = vand.u32 4294901760, %v137_v42  ;;  %v143_v49 = vsub.f32 %v141_v47, %v142_v48  ;;  %v28_v51 = vlaneseq }
   0xd   :  { %215 = vmatpush.msra.mxu3 %v569_v14  ;;  %66 = vmatpush.msra.mxu0 %v569_v14  ;;  %vm42_vm0 = vcmask 523264   ;;  %v505_v54 = vmov 0.0   ;;  %vm317_vm3 = vcmask 261120  }
   0xe   :  { %109 = vmatpush.msra.mxu1 %v108_v35  ;;  %177 = vmatpush.msra.mxu2 %v123_v21  ;;  %v144_v50 = vand.u32 4294901760, %v143_v49  ;;  %v29_v52 = vand.u32 127, %v28_v51 }
   0xf   :  { %217 = vmatpush.msra.mxu3 %v572_v15  ;;  %68 = vmatpush.msra.mxu0 %v572_v15 }
  0x10   :  { %115 = vmatpush.msra.mxu1 %v114_v36  ;;  %180 = vmatpush.msra.mxu2 %v129_v22 }
  0x11   :  { %219 = vmatpush.msra.mxu3 %v574_v16  ;;  %70 = vmatpush.msra.mxu0 %v574_v16 }
  0x12   :  { %121 = vmatpush.msra.mxu1 %v120_v39  ;;  %183 = vmatpush.msra.mxu2 %v135_v29 }
  0x13   :  { %221 = vmatpush.msra.mxu3 %v71_v46  ;;  %72 = vmatpush.msra.mxu0 %v71_v46 }
  0x14   :  { %127 = vmatpush.msra.mxu1 %v126_v41  ;;  %186 = vmatpush.msra.mxu2 %v141_v47 }
  0x15   :  { %451 = vmatpush.msrb.mxu3 %v541_v3  ;;  %246 = vmatpush.msrb.mxu0 %v100_v20 }
  0x16   :  { %133 = vmatpush.msra.mxu1 %v132_v43  ;;  %443 = vmatpush.msrb.mxu2 %v100_v20 }
  0x17   :  { %452 = vmatpush.msrb.mxu3 %v552_v7  ;;  %250 = vmatpush.msrb.mxu0 %v106_v23 }
  0x18   :  { %139 = vmatpush.msra.mxu1 %v138_v44  ;;  %444 = vmatpush.msrb.mxu2 %v106_v23 }
  0x19   :  { %453 = vmatpush.msrb.mxu3 %v554_v8  ;;  %254 = vmatpush.msrb.mxu0 %v112_v24 }
  0x1a   :  { %445 = vmatpush.msrb.mxu2 %v112_v24  ;;  %145 = vmatpush.msra.mxu1 %v144_v50 }
  0x1b   :  { %454 = vmatpush.msrb.mxu3 %v556_v9  ;;  %258 = vmatpush.msrb.mxu0 %v582_v25 }
  0x1c   :  { %293 = vmatpush.msrb.mxu1 %v541_v3  ;;  %446 = vmatpush.msrb.mxu2 %v582_v25 }
  0x1d   :  { %455 = vmatpush.msrb.mxu3 %v569_v14  ;;  %262 = vmatpush.msrb.mxu0 %v588_v28 }
  0x1e   :  { %295 = vmatpush.msrb.mxu1 %v552_v7  ;;  %447 = vmatpush.msrb.mxu2 %v588_v28  ;;  %v506_v28 = vmov 32.0  }
  0x1f   :  { %456 = vmatpush.msrb.mxu3 %v572_v15  ;;  %266 = vmatpush.msrb.mxu0 %v130_v34  ;;  %468 = vrcp.f32 %v506_v28 }
  0x20   :  { %297 = vmatpush.msrb.mxu1 %v554_v8  ;;  %448 = vmatpush.msrb.mxu2 %v130_v34 }
  0x21   :  { %457 = vmatpush.msrb.mxu3 %v574_v16  ;;  %270 = vmatpush.msrb.mxu0 %v136_v38 }
  0x22   :  { %299 = vmatpush.msrb.mxu1 %v556_v9  ;;  %449 = vmatpush.msrb.mxu2 %v136_v38 }
  0x23   :  { %458 = vmatpush.msrb.mxu3 %v71_v46  ;;  %274 = vmatpush.msrb.mxu0 %v142_v48 }
  0x24   :  { %301 = vmatpush.msrb.mxu1 %v569_v14  ;;  %450 = vmatpush.msrb.mxu2 %v142_v48 }
  0x25   :  { %v469_v29 = vpop.eup %468 }
  0x26   :  { %303 = vmatpush.msrb.mxu1 %v572_v15  ;;  %v325_v30 = vmul.f32 32.0, %v469_v29  ;;  %vm329_vm4 = vweird.f32 %v469_v29 }
  0x28   :  { %305 = vmatpush.msrb.mxu1 %v574_v16  ;;  %v326_v31 = vsub.f32 1.0, %v325_v30 }
  0x2a   :  { %307 = vmatpush.msrb.mxu1 %v71_v46  ;;  %v327_v32 = vmul.f32 %v469_v29, %v326_v31 }
  0x2c   :  { %v328_v33 = vadd.f32 %v469_v29, %v327_v32 }
  0x2e   :  { %v330_v34 = vsel %vm329_vm4, %v469_v29, %v328_v33 }
  0x74   :  { %v32_v53 = vpop.permute.xlu0 %31 }
  0x75   :  { %vm36_vm1 = vcmp.eq.s32.totalorder %v32_v53, %v29_v52 }
  0x76   :  { %v435_v55 = vsel %vm36_vm1, 1.0, %v505_v54 }
  0x77   :  { %437 = vmatmul.msk.f32.vlgmr.msra.gmra.mxu1 %vm42_vm0, %v435_v55  ;;  %v44_v56 = vsel %vm42_vm0, %v435_v55, 0 }
  0x78   :  { %v74_v57 = vsub.f32 %v44_v56, %v44_v56 }
  0x7a   :  { %189 = vmatmul.f32.vlgmr.msra.gmra.mxu2 %v74_v57  ;;  %v75_v58 = vand.u32 4294901760, %v74_v57 }
  0x7c   :  { %225 = vmatmul.f32.vlgmr.msra.gmra.mxu3 %v75_v58  ;;  %v76_v60 = vsub.f32 %v74_v57, %v75_v58 }
  0x7d   :  { %v35_v59 = vpop.permute.xlu0 %34 }
  0x7e   :  { %vm37_vm2 = vcmp.eq.s32.totalorder %v35_v59, %v29_v52  ;;  %v77_v62 = vand.u32 4294901760, %v76_v60 }
  0x7f   :  { %v436_v61 = vsel %vm37_vm2, 1.0, %v505_v54 }
  0x80   :  { %438 = vmatmul.msk.f32.gmra.mxu1 %vm42_vm0, %v436_v61  ;;  %v47_v63 = vsel %vm42_vm0, %v436_v61, 0  ;;  %78 = vmatmul.f32.vlgmr.msra.gmra.mxu0 %v77_v62 }
  0x81   :  { %v82_v0 = vsub.f32 %v47_v63, %v47_v63 }
  0x83   :  { %194 = vmatmul.f32.gmra.mxu2 %v82_v0  ;;  %v83_v1 = vand.u32 4294901760, %v82_v0 }
  0x85   :  { %231 = vmatmul.f32.gmra.mxu3 %v83_v1  ;;  %v84_v2 = vsub.f32 %v82_v0, %v83_v1 }
  0x87   :  { %v85_v3 = vand.u32 4294901760, %v84_v2 }
  0x88   :  { %441 = vmatmul.msk.f32.vlgmr.msrb.gmra.mxu1 %vm42_vm0, %v435_v55 }
  0x89   :  { %86 = vmatmul.f32.gmra.mxu0 %v85_v3 }
  0x8b   :  { %440 = vmatmul.msk.f32.vlgmr.msrb.gmra.mxu2 %vm42_vm0, %v436_v61 }
  0x8d   :  { %442 = vmatmul.msk.f32.vlgmr.msrb.gmra.mxu3 %vm42_vm0, %v436_v61 }
  0x91   :  { %439 = vmatmul.msk.f32.vlgmr.msrb.gmra.mxu0 %vm42_vm0, %v435_v55 }
  0xf4   :  { %v148_v4 = vpop.f32.mrf.mxu1 }
  0xfd   :  { %v79_v5 = vpop.f32.mrf.mxu0  ;;  %v190_v6 = vpop.f32.mrf.mxu2 }
  0xfe   :  { %v152_v8 = vpop.f32.mrf.mxu1  ;;  %v149_v9 = vadd.f32 %v148_v4, %v79_v5 }
  0xff   :  { %v226_v7 = vpop.f32.mrf.mxu3 }
 0x100   :  { %v191_v12 = vadd.f32 %v190_v6, %v149_v9 }
 0x102   :  { %v227_v15 = vadd.f32 %v226_v7, %v191_v12 }
 0x106   :  { %v87_v10 = vpop.f32.mrf.mxu0  ;;  %v195_v11 = vpop.f32.mrf.mxu2 }
 0x107   :  { %v153_v13 = vadd.f32 %v152_v8, %v87_v10  ;;  %v310_v19 = vpop.f32.mrf.mxu1 }
 0x108   :  { %v232_v14 = vpop.f32.mrf.mxu3 }
 0x109   :  { %v196_v16 = vadd.f32 %v195_v11, %v153_v13 }
 0x10b   :  { %v233_v21 = vadd.f32 %v232_v14, %v196_v16  ;;  %v466_v14 = vld [vmem:[%s659_s2] ss:$0 sm:$0xff]  ;;  %s507_s2 = smov [#allocation2]  }
 0x10c   :  { %s421_s11 = sshll.u32 %s507_s2, 4  ;;  %s422_s11 = int_to_ptr.vmem [resolvable:$true] %s421_s11 }
 0x10e   :  { %v277_v17 = vpop.f32.mrf.mxu0  ;;  %v281_v20 = vpop.f32.mrf.mxu2 }
 0x10f   :  { %v278_v18 = vadd.f32 %v277_v17, %v227_v15  ;;  %v282_v23 = vadd.f32 %v281_v20, %v233_v21 }
 0x110   :  { %v314_v25 = vpop.f32.mrf.mxu3 }
 0x111   :  { %v311_v22 = vadd.f32 %v310_v19, %v278_v18  ;;  %v315_v26 = vadd.f32 %v314_v25, %v282_v23 }
 0x113   :  { %v318_v24 = vsel %vm317_vm3, %v311_v22, 0.0  ;;  %v321_v27 = vsel %vm317_vm3, %v315_v26, 0.0 }
 0x114   :  { %319 = vadd.xlane.f32.xlu1 %v318_v24 }
 0x11c   :  { %322 = vadd.xlane.f32.xlu1 %v321_v27 }
 0x187   :  { %v320_v35 = vpop.xlane.xlu1 %319 }
 0x188   :  { %v331_v36 = vmul.f32 %v330_v34, %v320_v35 }
 0x18a   :  { %v634_v37 = vsub.f32 %v311_v22, %v331_v36  ;;  %v467_v22 = vld [vmem:[%s660_s3] ss:$0 sm:$0xff] }
 0x18c   :  { %v335_v38 = vmul.f32 %v634_v37, %v634_v37 }
 0x18e   :  { %v337_v39 = vsel %vm317_vm3, %v335_v38, 0.0 }
 0x18f   :  { %338 = vadd.xlane.f32.xlu2 %v337_v39  ;;  %v323_v40 = vpop.xlane.xlu1 %322 }
 0x190   :  { %v332_v41 = vmul.f32 %v330_v34, %v323_v40 }
 0x192   :  { %v639_v42 = vsub.f32 %v315_v26, %v332_v41 }
 0x194   :  { %v336_v43 = vmul.f32 %v639_v42, %v639_v42 }
 0x196   :  { %v340_v44 = vsel %vm317_vm3, %v336_v43, 0.0 }
 0x197   :  { %341 = vadd.xlane.f32.xlu2 %v340_v44 }
 0x202   :  { %v339_v45 = vpop.xlane.xlu2 %338 }
 0x203   :  { %v343_v46 = vmul.f32 0.032258064, %v339_v45 }
 0x205   :  { %470 = vrsqrt.f32 %v343_v46  ;;  %vm352_vm5 = vcmp.eq.f32.partialorder %v343_v46, inf  ;;  %v355_v59 = vand.u32 2147483648, %v343_v46  ;;  %vm354_vm6 = vcmp.eq.f32.partialorder %v343_v46, 0.0 }
 0x20a   :  { %v342_v47 = vpop.xlane.xlu2 %341 }
 0x20b   :  { %v471_v48 = vpop.eup %470  ;;  %v344_v49 = vmul.f32 0.032258064, %v342_v47 }
 0x20c   :  { %v346_v50 = vmul.f32 %v471_v48, %v343_v46 }
 0x20d   :  { %472 = vrsqrt.f32 %v344_v49  ;;  %vm364_vm7 = vcmp.eq.f32.partialorder %v344_v49, inf  ;;  %v367_v3 = vand.u32 2147483648, %v344_v49  ;;  %vm366_vm8 = vcmp.eq.f32.partialorder %v344_v49, 0.0 }
 0x20e   :  { %v347_v51 = vmul.f32 %v471_v48, %v346_v50 }
 0x210   :  { %v348_v52 = vmul.f32 0.5, %v347_v51 }
 0x212   :  { %v349_v53 = vsub.f32 1.5, %v348_v52 }
 0x213   :  { %v473_v54 = vpop.eup %472 }
 0x214   :  { %v350_v55 = vmul.f32 %v471_v48, %v349_v53  ;;  %v358_v56 = vmul.f32 %v473_v54, %v344_v49 }
 0x216   :  { %v351_v57 = vmul.f32 %v350_v55, %v343_v46  ;;  %v359_v58 = vmul.f32 %v473_v54, %v358_v56 }
 0x218   :  { %v353_v60 = vsel %vm352_vm5, %v343_v46, %v351_v57  ;;  %v360_v61 = vmul.f32 0.5, %v359_v58 }
 0x219   :  { %v356_v62 = vsel %vm354_vm6, %v355_v59, %v353_v60 }
 0x21a   :  { %v369_v63 = vadd.f32 1e-06, %v356_v62  ;;  %v361_v0 = vsub.f32 1.5, %v360_v61 }
 0x21c   :  { %474 = vrcp.f32 %v369_v63  ;;  %v362_v1 = vmul.f32 %v473_v54, %v361_v0  ;;  %v382_v10 = vand.u32 2147483648, %v369_v63  ;;  %v380_v12 = vand.u32 2147483647, %v369_v63 }
 0x21d   :  { %vm376_vm10 = vweird.f32 %v369_v63 }
 0x21e   :  { %v363_v2 = vmul.f32 %v362_v1, %v344_v49  ;;  %v383_v16 = vor.u32 1.1754944e-38, %v382_v10  ;;  %vm381_vm12 = vcmp.eq.f32.partialorder %v380_v12, 8.507059e+37 }
 0x220   :  { %v365_v4 = vsel %vm364_vm7, %v344_v49, %v363_v2 }
 0x221   :  { %v368_v5 = vsel %vm366_vm8, %v367_v3, %v365_v4 }
 0x222   :  { %v475_v6 = vpop.eup %474  ;;  %v370_v7 = vadd.f32 1e-06, %v368_v5 }
 0x223   :  { %v372_v8 = vmul.f32 %v475_v6, %v369_v63  ;;  %vm377_vm9 = vweird.f32 %v475_v6 }
 0x224   :  { %476 = vrcp.f32 %v370_v7  ;;  %vm378_vm11 = vmor %vm376_vm10, %vm377_vm9  ;;  %v397_v23 = vand.u32 2147483648, %v370_v7  ;;  %v395_v25 = vand.u32 2147483647, %v370_v7  ;;  %vm391_vm14 = vweird.f32 %v370_v7 }
 0x225   :  { %v373_v9 = vsub.f32 1.0, %v372_v8 }
 0x226   :  { %v398_v29 = vor.u32 1.1754944e-38, %v397_v23  ;;  %vm396_vm0 = vcmp.eq.f32.partialorder %v395_v25, 8.507059e+37 }
 0x227   :  { %v374_v11 = vmul.f32 %v475_v6, %v373_v9 }
 0x229   :  { %v375_v13 = vadd.f32 %v475_v6, %v374_v11 }
 0x22a   :  { %v477_v15 = vpop.eup %476 }
 0x22b   :  { %v379_v17 = vsel %vm378_vm11, %v475_v6, %v375_v13  ;;  %v387_v18 = vmul.f32 %v477_v15, %v370_v7  ;;  %vm392_vm13 = vweird.f32 %v477_v15 }
 0x22c   :  { %v384_v19 = vsel %vm381_vm12, %v383_v16, %v379_v17  ;;  %vm393_vm15 = vmor %vm391_vm14, %vm392_vm13 }
 0x22d   :  { %v388_v20 = vsub.f32 1.0, %v387_v18  ;;  %v405_v21 = vmul.f32 %v466_v14, %v384_v19 }
 0x22f   :  { %v389_v24 = vmul.f32 %v477_v15, %v388_v20  ;;  %v407_v26 = vmul.f32 %v405_v21, %v634_v37 }
 0x231   :  { %v390_v27 = vadd.f32 %v477_v15, %v389_v24  ;;  %v413_v28 = vadd.f32 %v467_v22, %v407_v26 }
 0x233   :  { %v394_v30 = vsel %vm393_vm15, %v477_v15, %v390_v27  ;;  %415 = vst.msk [vmem:[#allocation2] sm:$0xff] %vm317_vm3, %v413_v28 }
 0x234   :  { %v399_v31 = vsel %vm396_vm0, %v398_v29, %v394_v30 }
 0x235   :  { %v406_v32 = vmul.f32 %v466_v14, %v399_v31 }
 0x237   :  { %v408_v33 = vmul.f32 %v406_v32, %v639_v42 }
 0x239   :  { %v414_v34 = vadd.f32 %v467_v22, %v408_v33 }
 0x23b   :  { %416 = vst.msk [vmem:[#allocation2 + $0x8] sm:$0xff] %vm317_vm3, %v414_v34 }
 0x23c   :  { %429 = dma.vmem_to_hbm [thread:$0]  %s422_s11, 256, %s424_s13, [#allocation3], %s508_s14, %s508_s14, %s509_s15  }
 0x23d   :  { %502 = dma.done.wait [#allocation3], 256  }
 0x23e   :  { %503 = vsyncadd [#allocation3], 4294967040 }
 0x23f   :  { %434 = vsyncpa [#allocation3], 1 }

</bundles_post_ra>
